<compile_context>
chip_gen: v7x
topology: tpu7x:2x2x1
jax: 0.10.0
libtpu: 0.0.40
codegen_flags: <defaults>
</compile_context>

<pallas_src>
import jax
import jax.numpy as jnp
from jax.experimental import pallas as pl
from jax.experimental.pallas import tpu as pltpu

LANE = 128            # lane (last-dim) tile width
BF16_SUBLANE = 16     # bf16 packs [16, 128] per vreg -> batch tiles multiple of 16
_NEG_INF = -1e30      # safe only while logits stay f32 (they do)
_MAX_TILE_B = 2048
_VMEM_SLACK = 2 * 1024 * 1024   # headroom for compiler-internal scratch


def _round_up(x, m):
    return ((x + m - 1) // m) * m


def _vmem_budget_bytes():
    """~3/4 of per-core VMEM: ~48 MiB on v7x (64 MiB), ~96 MiB on v5e/v6e (128 MiB)."""
    try:
        cap = int(pltpu.get_tpu_info().vmem_capacity_bytes)
    except Exception:
        cap = 64 * 1024 * 1024      # conservative (v7x-sized) fallback
    return max(32 * 1024 * 1024, cap * 3 // 4)


def _make_mlp_kernel(n_hidden, output_size):
    """Kernel refs: (x, w1, b1, ..., wH, bH, w_out, b_out, out).

    x / weights are bf16 (MXU operands); biases f32. Matmuls accumulate in f32 on
    the MXU; bias add / ReLU / masked log-softmax run in f32 on the VPU/EUP.
    """

    def kernel(*refs):
        x_ref = refs[0]
        out_ref = refs[-1]
        p = refs[1:-1]

        h = x_ref[...]                                  # bf16 [TILE_B, F_pad]
        for i in range(n_hidden):                       # hidden Linear + ReLU stack
            w = p[2 * i][...]                           # bf16 [in_pad, out_pad]
            b = p[2 * i + 1][...]                       # f32  [1, out_pad]
            a = jnp.dot(h, w, preferred_element_type=jnp.float32) + b
            h = jnp.maximum(a, 0.0).astype(jnp.bfloat16)

        wo = p[2 * n_hidden][...]
        bo = p[2 * n_hidden + 1][...]
        logits = jnp.dot(h, wo, preferred_element_type=jnp.float32) + bo  # f32

        # mask padded logit lanes so they don't corrupt the softmax normalizer
        lane = jax.lax.broadcasted_iota(jnp.int32, logits.shape, 1)
        valid = lane < output_size
        logits = jnp.where(valid, logits, _NEG_INF)

        # numerically stable log_softmax over dim=1
        m = jnp.max(logits, axis=1, keepdims=True)
        y = logits - m
        lse = jnp.log(jnp.sum(jnp.exp(y), axis=1, keepdims=True))
        res = y - lse
        out_ref[...] = jnp.where(valid, res, 0.0).astype(out_ref.dtype)

    return kernel


def prepare_params(lin_params, out_params, in_dim):
    """Pad & cast parameters ONCE: W -> bf16 [in_pad, out_pad], b -> f32 [1, out_pad]."""
    F_pad = _round_up(in_dim, LANE)
    hidden_pad = [_round_up(W.shape[1], LANE) for W, _ in lin_params]
    output_size = int(out_params[1].shape[0])
    out_pad = _round_up(output_size, LANE)

    in_pads = [F_pad] + hidden_pad
    out_pads = hidden_pad + [out_pad]
    flat = []
    for (W, b), ip, op in zip(list(lin_params) + [out_params], in_pads, out_pads):
        Wp = jnp.pad(W.astype(jnp.bfloat16),
                     ((0, ip - W.shape[0]), (0, op - W.shape[1])))
        bp = jnp.pad(b.astype(jnp.float32), (0, op - b.shape[0])).reshape(1, op)
        flat += [Wp, bp]

    meta = dict(F=int(in_dim), F_pad=F_pad, output_size=output_size, out_pad=out_pad,
                in_pads=in_pads, out_pads=out_pads, n_hidden=len(lin_params))
    return tuple(flat), meta


def feed_forward_nn_pallas(cont_data, cat_data, emb_tables, flat_params, meta):
    """Forward pass equivalent to FeedForwardNN.forward.

    cont_data  : [B, no_of_cont] float32 (or None)
    cat_data   : [B, n_cat] int32
    emb_tables : list of [vocab_i, emb_dim_i] float32
    flat_params: output of prepare_params (padded bf16 weights / f32 biases)
    returns    : [B, output_size] float32 log-probabilities
    """
    # --- glue: embedding gathers + concat (feature axis); x emitted in bf16 ---
    pieces = [jnp.take(t, cat_data[:, i], axis=0) for i, t in enumerate(emb_tables)]
    if cont_data is not None and cont_data.shape[1] > 0:
        pieces.append(cont_data)
    x = jnp.concatenate(pieces, axis=1).astype(jnp.bfloat16)   # [B, F]

    B, F = x.shape
    F_pad = meta["F_pad"]
    out_pad = meta["out_pad"]
    output_size = meta["output_size"]
    n_hidden = meta["n_hidden"]
    assert F == meta["F"]

    # ---- batch tile from VMEM buffer math ----
    weight_bytes = sum(int(p.size) * p.dtype.itemsize for p in flat_params)
    per_row = 2 * F_pad * 2 + 2 * out_pad * 4       # 2 bf16 x-bufs + 2 f32 out-bufs
    budget = _vmem_budget_bytes()
    cap_rows = max((budget - weight_bytes - _VMEM_SLACK) // per_row, BF16_SUBLANE)
    if cap_rows >= 256:
        cap_rows = (cap_rows // 256) * 256          # 256-aligned tiles when possible
    else:
        cap_rows = (cap_rows // BF16_SUBLANE) * BF16_SUBLANE
    cap_rows = max(int(cap_rows), BF16_SUBLANE)

    B16 = _round_up(B, BF16_SUBLANE)                # bf16 min sublane tile is 16
    TILE_B = max(min(cap_rows, _MAX_TILE_B, B16), BF16_SUBLANE)
    if B16 >= 2 * BF16_SUBLANE:                     # >=2 balanced tiles -> both v7x TCs busy
        TILE_B = min(TILE_B, _round_up((B16 + 1) // 2, BF16_SUBLANE))
    B_pad = _round_up(B16, TILE_B)
    grid = (B_pad // TILE_B,)

    x_pad = jnp.pad(x, ((0, B_pad - B), (0, F_pad - F)))

    kernel = _make_mlp_kernel(n_hidden, output_size)

    # x/out tiled along batch; weights/biases VMEM-resident, single-buffered
    in_specs = [pl.BlockSpec((TILE_B, F_pad), lambda i: (i, 0))]
    for prm in flat_params:
        in_specs.append(pl.BlockSpec(prm.shape, lambda i: (0, 0),
                                     pipeline_mode=pl.Buffered(1)))
    out_spec = pl.BlockSpec((TILE_B, out_pad), lambda i: (i, 0))

    flops = 2 * B_pad * sum(ip * op for ip, op in zip(meta["in_pads"], meta["out_pads"]))
    cost = pl.CostEstimate(
        flops=flops,
        transcendentals=B_pad * out_pad,                       # exp in log-softmax
        bytes_accessed=B_pad * F_pad * 2 + weight_bytes + B_pad * out_pad * 4,
    )

    fn = pl.pallas_call(
        kernel,
        out_shape=jax.ShapeDtypeStruct((B_pad, out_pad), jnp.float32),
        grid_spec=pltpu.PrefetchScalarGridSpec(
            num_scalar_prefetch=0,
            grid=grid,
            in_specs=in_specs,
            out_specs=out_spec,
        ),
        compiler_params=pltpu.CompilerParams(
            dimension_semantics=("parallel",),   # shard batch tiles across TCs (v7x)
            vmem_limit_bytes=int(budget),
        ),
        cost_estimate=cost,
    )
    out_padded = fn(x_pad, *flat_params)
    return out_padded[:B, :output_size]


def _reference(cont_data, cat_data, emb_tables, lin_params, out_params):
    """Pure-JAX f32 reference for validation."""
    pieces = [jnp.take(t, cat_data[:, i], axis=0) for i, t in enumerate(emb_tables)]
    if cont_data is not None and cont_data.shape[1] > 0:
        pieces.append(cont_data)
    x = jnp.concatenate(pieces, axis=1).astype(jnp.float32)
    for W, b in lin_params:
        x = jax.nn.relu(x @ W + b)
    Wo, bo = out_params
    return jax.nn.log_softmax(x @ Wo + bo, axis=1)


if __name__ == "__main__":
    # Module config (small, consistent with FeedForwardNN.__init__)
    emb_dims = [(10, 4), (8, 3)]          # no_of_embs = 7
    no_of_cont = 5
    lin_layer_sizes = [32, 16]
    output_size = 4
    batch = 8

    key = jax.random.PRNGKey(0)
    keys = jax.random.split(key, 16)

    # deterministic parameter init
    emb_tables = [
        0.1 * jax.random.normal(keys[i], (v, d), dtype=jnp.float32)
        for i, (v, d) in enumerate(emb_dims)
    ]
    in_dim = sum(d for _, d in emb_dims) + no_of_cont
    sizes = [in_dim] + lin_layer_sizes
    lin_params = []
    for i in range(len(lin_layer_sizes)):
        W = 0.1 * jax.random.normal(keys[4 + 2 * i], (sizes[i], sizes[i + 1]), dtype=jnp.float32)
        b = 0.1 * jax.random.normal(keys[5 + 2 * i], (sizes[i + 1],), dtype=jnp.float32)
        lin_params.append((W, b))
    Wo = 0.1 * jax.random.normal(keys[10], (lin_layer_sizes[-1], output_size), dtype=jnp.float32)
    bo = 0.1 * jax.random.normal(keys[11], (output_size,), dtype=jnp.float32)
    out_params = (Wo, bo)

    # deterministic inputs
    cont_data = jax.random.normal(keys[12], (batch, no_of_cont), dtype=jnp.float32)
    cat_data = jnp.stack(
        [
            jax.random.randint(keys[13], (batch,), 0, emb_dims[0][0]),
            jax.random.randint(keys[14], (batch,), 0, emb_dims[1][0]),
        ],
        axis=1,
    ).astype(jnp.int32)

    # padded bf16 weights prepared once (hoisted out of the per-call hot path)
    flat_params, meta = prepare_params(lin_params, out_params, in_dim)

    fwd = jax.jit(lambda c, k: feed_forward_nn_pallas(c, k, emb_tables, flat_params, meta))
    out = jax.block_until_ready(fwd(cont_data, cat_data))

    ref = _reference(cont_data, cat_data, emb_tables, lin_params, out_params)
    assert out.shape == (batch, output_size)
    # kernel uses bf16 MXU operands -> compare to the f32 reference with a tolerance
    # covering bf16 rounding of the matmul inputs.
    assert jnp.allclose(out, ref, atol=2e-2, rtol=2e-2)

    print("KERNEL_OK")
</pallas_src>

<mosaic_0001>
module attributes {stable_mosaic.version = 11 : i64} {
  func.func @kernel(%arg0: i32, %arg1: memref<16x128xbf16, #tpu.memory_space<vmem>>, %arg2: memref<128x128xbf16, #tpu.memory_space<vmem>>, %arg3: memref<1x128xf32, #tpu.memory_space<vmem>>, %arg4: memref<128x128xbf16, #tpu.memory_space<vmem>>, %arg5: memref<1x128xf32, #tpu.memory_space<vmem>>, %arg6: memref<128x128xbf16, #tpu.memory_space<vmem>>, %arg7: memref<1x128xf32, #tpu.memory_space<vmem>>, %arg8: memref<16x128xf32, #tpu.memory_space<vmem>>) attributes {dimension_semantics = [#tpu.dimension_semantics<parallel>], iteration_bounds = array<i64: 1>, scalar_prefetch = 0 : i64, scratch_operands = 0 : i64, tpu.core_type = #tpu.core_type<tc>, window_params = [{transform_indices = @transform_0, window_bounds = array<i64: 16, 128>}, {pipeline_mode = #tpu.pipeline_mode<synchronous>, transform_indices = @transform_1, window_bounds = array<i64: 128, 128>}, {pipeline_mode = #tpu.pipeline_mode<synchronous>, transform_indices = @transform_2, window_bounds = array<i64: 1, 128>}, {pipeline_mode = #tpu.pipeline_mode<synchronous>, transform_indices = @transform_3, window_bounds = array<i64: 128, 128>}, {pipeline_mode = #tpu.pipeline_mode<synchronous>, transform_indices = @transform_4, window_bounds = array<i64: 1, 128>}, {pipeline_mode = #tpu.pipeline_mode<synchronous>, transform_indices = @transform_5, window_bounds = array<i64: 128, 128>}, {pipeline_mode = #tpu.pipeline_mode<synchronous>, transform_indices = @transform_6, window_bounds = array<i64: 1, 128>}, {transform_indices = @transform_7, window_bounds = array<i64: 16, 128>}]} {
    %c0 = arith.constant 0 : index
    %c0_0 = arith.constant 0 : index
    %0 = vector.load %arg1[%c0, %c0_0] : memref<16x128xbf16, #tpu.memory_space<vmem>>, vector<16x128xbf16>
    %c0_1 = arith.constant 0 : index
    %c0_2 = arith.constant 0 : index
    %1 = vector.load %arg2[%c0_1, %c0_2] : memref<128x128xbf16, #tpu.memory_space<vmem>>, vector<128x128xbf16>
    %c0_3 = arith.constant 0 : index
    %c0_4 = arith.constant 0 : index
    %2 = vector.load %arg3[%c0_3, %c0_4] : memref<1x128xf32, #tpu.memory_space<vmem>>, vector<1x128xf32>
    %cst = arith.constant dense<0.000000e+00> : vector<16x128xf32>
    %3 = tpu.matmul %0, %1, %cst {dimension_numbers = #tpu.dot_dimension_numbers<[1], [0], [0], [1], [0, 0, 1, 1], [], []>} : vector<16x128xbf16>, vector<128x128xbf16>, vector<16x128xf32> -> vector<16x128xf32>
    %4 = vector.broadcast %2 : vector<1x128xf32> to vector<16x128xf32>
    %5 = arith.addf %3, %4 : vector<16x128xf32>
    %cst_5 = arith.constant 0.000000e+00 : f32
    %6 = vector.broadcast %cst_5 : f32 to vector<16x128xf32>
    %7 = arith.maximumf %5, %6 : vector<16x128xf32>
    %8 = arith.truncf %7 : vector<16x128xf32> to vector<16x128xbf16>
    %c0_6 = arith.constant 0 : index
    %c0_7 = arith.constant 0 : index
    %9 = vector.load %arg4[%c0_6, %c0_7] : memref<128x128xbf16, #tpu.memory_space<vmem>>, vector<128x128xbf16>
    %c0_8 = arith.constant 0 : index
    %c0_9 = arith.constant 0 : index
    %10 = vector.load %arg5[%c0_8, %c0_9] : memref<1x128xf32, #tpu.memory_space<vmem>>, vector<1x128xf32>
    %cst_10 = arith.constant dense<0.000000e+00> : vector<16x128xf32>
    %11 = tpu.matmul %8, %9, %cst_10 {dimension_numbers = #tpu.dot_dimension_numbers<[1], [0], [0], [1], [0, 0, 1, 1], [], []>} : vector<16x128xbf16>, vector<128x128xbf16>, vector<16x128xf32> -> vector<16x128xf32>
    %12 = vector.broadcast %10 : vector<1x128xf32> to vector<16x128xf32>
    %13 = arith.addf %11, %12 : vector<16x128xf32>
    %cst_11 = arith.constant 0.000000e+00 : f32
    %14 = vector.broadcast %cst_11 : f32 to vector<16x128xf32>
    %15 = arith.maximumf %13, %14 : vector<16x128xf32>
    %16 = arith.truncf %15 : vector<16x128xf32> to vector<16x128xbf16>
    %c0_12 = arith.constant 0 : index
    %c0_13 = arith.constant 0 : index
    %17 = vector.load %arg6[%c0_12, %c0_13] : memref<128x128xbf16, #tpu.memory_space<vmem>>, vector<128x128xbf16>
    %c0_14 = arith.constant 0 : index
    %c0_15 = arith.constant 0 : index
    %18 = vector.load %arg7[%c0_14, %c0_15] : memref<1x128xf32, #tpu.memory_space<vmem>>, vector<1x128xf32>
    %cst_16 = arith.constant dense<0.000000e+00> : vector<16x128xf32>
    %19 = tpu.matmul %16, %17, %cst_16 {dimension_numbers = #tpu.dot_dimension_numbers<[1], [0], [0], [1], [0, 0, 1, 1], [], []>} : vector<16x128xbf16>, vector<128x128xbf16>, vector<16x128xf32> -> vector<16x128xf32>
    %20 = vector.broadcast %18 : vector<1x128xf32> to vector<16x128xf32>
    %21 = arith.addf %19, %20 : vector<16x128xf32>
    %22 = tpu.iota {dimensions = array<i32: 1>} : vector<16x128xi32>
    %c4_i32 = arith.constant 4 : i32
    %23 = vector.broadcast %c4_i32 : i32 to vector<16x128xi32>
    %24 = arith.cmpi slt, %22, %23 : vector<16x128xi32>
    %cst_17 = arith.constant -1.000000e+30 : f32
    %25 = vector.broadcast %cst_17 : f32 to vector<16x128xf32>
    %26 = arith.select %24, %21, %25 : vector<16x128xi1>, vector<16x128xf32>
    %cst_18 = arith.constant dense<0xFF800000> : vector<16xf32>
    %27 = vector.multi_reduction <maximumf>, %26, %cst_18 [1] : vector<16x128xf32> to vector<16xf32>
    %28 = vector.shape_cast %27 : vector<16xf32> to vector<16x1xf32>
    %29 = vector.broadcast %28 : vector<16x1xf32> to vector<16x128xf32>
    %30 = arith.subf %26, %29 : vector<16x128xf32>
    %31 = math.exp %30 : vector<16x128xf32>
    %cst_19 = arith.constant dense<0.000000e+00> : vector<16xf32>
    %32 = vector.multi_reduction <add>, %31, %cst_19 [1] : vector<16x128xf32> to vector<16xf32>
    %33 = vector.shape_cast %32 : vector<16xf32> to vector<16x1xf32>
    %34 = math.log %33 : vector<16x1xf32>
    %35 = vector.broadcast %34 : vector<16x1xf32> to vector<16x128xf32>
    %36 = arith.subf %30, %35 : vector<16x128xf32>
    %cst_20 = arith.constant 0.000000e+00 : f32
    %37 = vector.broadcast %cst_20 : f32 to vector<16x128xf32>
    %38 = arith.select %24, %36, %37 : vector<16x128xi1>, vector<16x128xf32>
    %c0_21 = arith.constant 0 : index
    %c0_22 = arith.constant 0 : index
    %39 = vector.load %arg8[%c0_21, %c0_22] : memref<16x128xf32, #tpu.memory_space<vmem>>, vector<16x128xf32>
    tpu.vector_store %arg8[%c0_21, %c0_22], %38 {strides = array<i32>} : memref<16x128xf32, #tpu.memory_space<vmem>>, vector<16x128xf32>,
    return
  }
  func.func @transform_0(%arg0: i32) -> (i32, i32) {
    %c0_i32 = arith.constant 0 : i32
    %c0_i32_0 = arith.constant 0 : i32
    return %arg0, %c0_i32 : i32, i32
  }
  func.func @transform_1(%arg0: i32) -> (i32, i32) {
    %c0_i32 = arith.constant 0 : i32
    %c0_i32_0 = arith.constant 0 : i32
    %c0_i32_1 = arith.constant 0 : i32
    return %c0_i32, %c0_i32_0 : i32, i32
  }
  func.func @transform_2(%arg0: i32) -> (i32, i32) {
    %c0_i32 = arith.constant 0 : i32
    %c0_i32_0 = arith.constant 0 : i32
    %c0_i32_1 = arith.constant 0 : i32
    return %c0_i32, %c0_i32_0 : i32, i32
  }
  func.func @transform_3(%arg0: i32) -> (i32, i32) {
    %c0_i32 = arith.constant 0 : i32
    %c0_i32_0 = arith.constant 0 : i32
    %c0_i32_1 = arith.constant 0 : i32
    return %c0_i32, %c0_i32_0 : i32, i32
  }
  func.func @transform_4(%arg0: i32) -> (i32, i32) {
    %c0_i32 = arith.constant 0 : i32
    %c0_i32_0 = arith.constant 0 : i32
    %c0_i32_1 = arith.constant 0 : i32
    return %c0_i32, %c0_i32_0 : i32, i32
  }
  func.func @transform_5(%arg0: i32) -> (i32, i32) {
    %c0_i32 = arith.constant 0 : i32
    %c0_i32_0 = arith.constant 0 : i32
    %c0_i32_1 = arith.constant 0 : i32
    return %c0_i32, %c0_i32_0 : i32, i32
  }
  func.func @transform_6(%arg0: i32) -> (i32, i32) {
    %c0_i32 = arith.constant 0 : i32
    %c0_i32_0 = arith.constant 0 : i32
    %c0_i32_1 = arith.constant 0 : i32
    return %c0_i32, %c0_i32_0 : i32, i32
  }
  func.func @transform_7(%arg0: i32) -> (i32, i32) {
    %c0_i32 = arith.constant 0 : i32
    %c0_i32_0 = arith.constant 0 : i32
    return %arg0, %c0_i32 : i32, i32
  }
}

</mosaic_0001>

<bundles_post_ra>
// kernel: _lambda_.1
= control target key start
LH: loop header
LB: loop body
LE: loop exit
PB: predicated region body
PF: predicated region fallthrough
CT: control target
= control target key end

     0   :  { %12 = vsyncpa [#allocation3], 0  ;;  %s602_s24 = smov [#allocation2]   ;;  %s759_s0 = inlined_call_operand.vmem [shape: bf16[16,128], index: 0, kind: input, shape index: {}]   ;;  %s760_s1 = inlined_call_operand.vmem [shape: bf16[128,128], index: 1, kind: input, shape index: {}]   ;;  %s761_s2 = inlined_call_operand.vmem [shape: f32[1,128], index: 2, kind: input, shape index: {}]   ;;  %s762_s3 = inlined_call_operand.hbm [shape: bf16[128,128], index: 3, kind: input, shape index: {}]   ;;  %s763_s4 = inlined_call_operand.vmem [shape: f32[1,128], index: 4, kind: input, shape index: {}]   ;;  %s764_s5 = inlined_call_operand.vmem [shape: bf16[128,128], index: 5, kind: input, shape index: {}]   ;;  %s765_s6 = inlined_call_operand.vmem [shape: f32[1,128], index: 6, kind: input, shape index: {}]   ;;  %s766_s7 = inlined_call_operand.vmem [shape: f32[16,128], index: 7, kind: output, shape index: {}]  }
   0x1   :  { %s24_s25 = sshll.u32 %s602_s24, 4  ;;  %s578_s28 = scalar_lea.hbm %s762_s3, 1024  ;;  %s25_s25 = int_to_ptr.vmem [resolvable:$true] %s24_s25 }
   0x2   :  { %p579_p0 = scmp.ne.s32.totalorder %s762_s3, %s578_s28  ;;  %p582_p1 = scmp.lt.u32.totalorder %s578_s28, %s762_s3 }
   0x4   :  { %p584_p2 = pnand %p582_p1, %p579_p0 }
   0x6   :  { %587 = shalt.err (!%p584_p2)
}
   0x7   :  { %s588_s10 = scalar_lea.vmem %s25_s25, 1024  ;;  %p593_p4 = scmp.lt.s32.totalorder %s25_s25, %s25_s25 }
   0x8   :  { %p589_p3 = scmp.ne.s32.totalorder %s25_s25, %s588_s10  ;;  %p594_p5 = scmp.lt.s32.totalorder %s588_s10, %s588_s10 }
   0xa   :  { %p595_p6 = por %p594_p5, %p593_p4 }
   0xc   :  { %p596_p7 = pnand %p595_p6, %p589_p3 }
   0xe   :  { %599 = shalt.err (!%p596_p7)
}
   0xf   :  { %s603_s11 = smov 64   ;;  %s604_s12 = smov 4  }
  0x10   :  { %30 = dma.hbm_to_vmem [thread:$0]  %s762_s3, 1024, %s25_s25, [#allocation3], %s603_s11, %s603_s11, %s604_s12  }
  0x11   :  { %600 = dma.done.wait [#allocation3], 1024  }
  0x12   :  { %601 = vsyncadd [#allocation3], 4294966272  ;;  %v605_v0 = vmov 0.0   ;;  %vm606_vm0 = vmmov 0   ;;  %v545_v1 = vld [vmem:[%s760_s1] sm:$0xff]   ;;  %v546_v2 = vld [vmem:[%s760_s1 + $0x8] sm:$0xff]   ;;  %v391_v46 = vlaneseq }
  0x13   :  { %480 = vmatprep.subr.bf16.mxu0 %v605_v0  ;;  %496 = vmatprep.mubr.msk.bf16.mxu0 %vm606_vm0, %v605_v0  ;;  %v547_v3 = vld [vmem:[%s760_s1 + $0x10] sm:$0xff]   ;;  %v554_v4 = vld [vmem:[#allocation2] sm:$0xff]   ;;  %v548_v5 = vld [vmem:[%s760_s1 + $0x18] sm:$0xff]  }
  0x14   :  { %500 = vmatprep.subr.bf16.mxu1 %v605_v0  ;;  %516 = vmatprep.mubr.msk.bf16.mxu1 %vm606_vm0, %v605_v0  ;;  %v555_v6 = vld [vmem:[#allocation2 + $0x8] sm:$0xff]   ;;  %v549_v7 = vld [vmem:[%s760_s1 + $0x20] sm:$0xff]   ;;  %v556_v8 = vld [vmem:[#allocation2 + $0x10] sm:$0xff]   ;;  %v392_v47 = vand.u32 127, %v391_v46 }
  0x15   :  { %481 = vmatpush3.bf16.msra.mxu0 %v545_v1  ;;  %501 = vmatpush3.bf16.msra.mxu1 %v554_v4  ;;  %v550_v9 = vld [vmem:[%s760_s1 + $0x28] sm:$0xff]   ;;  %v557_v10 = vld [vmem:[#allocation2 + $0x18] sm:$0xff]   ;;  %v551_v11 = vld [vmem:[%s760_s1 + $0x30] sm:$0xff]  }
  0x16   :  { %482 = vmatprep.subr.bf16.mxu0 %v605_v0  ;;  %502 = vmatprep.subr.bf16.mxu1 %v605_v0  ;;  %v558_v12 = vld [vmem:[#allocation2 + $0x20] sm:$0xff]   ;;  %v552_v13 = vld [vmem:[%s760_s1 + $0x38] sm:$0xff]   ;;  %v559_v14 = vld [vmem:[#allocation2 + $0x28] sm:$0xff]   ;;  %vm393_vm1 = vcmp.lt.s32.totalorder %v392_v47, 4 }
  0x17   :  { %v553_v15 = vld [vmem:[%s759_s0] sm:$0xff]   ;;  %v560_v16 = vld [vmem:[#allocation2 + $0x30] sm:$0xff]   ;;  %v561_v17 = vld [vmem:[#allocation2 + $0x38] sm:$0xff]  }
  0x18   :  { %v562_v18 = vld [vmem:[%s764_s5] sm:$0xff]   ;;  %v563_v19 = vld [vmem:[%s764_s5 + $0x8] sm:$0xff]   ;;  %v564_v20 = vld [vmem:[%s764_s5 + $0x10] sm:$0xff]  }
  0x19   :  { %483 = vmatpush3.bf16.msra.mxu0 %v546_v2  ;;  %503 = vmatpush3.bf16.msra.mxu1 %v555_v6  ;;  %v565_v21 = vld [vmem:[%s764_s5 + $0x18] sm:$0xff]   ;;  %v566_v22 = vld [vmem:[%s764_s5 + $0x20] sm:$0xff]   ;;  %v567_v23 = vld [vmem:[%s764_s5 + $0x28] sm:$0xff]  }
  0x1a   :  { %484 = vmatprep.subr.bf16.mxu0 %v605_v0  ;;  %504 = vmatprep.subr.bf16.mxu1 %v605_v0  ;;  %v425_v24 = vld [vmem:[%s761_s2] ss:$0 sm:$0xff]  ;;  %v568_v34 = vld [vmem:[%s764_s5 + $0x30] sm:$0xff]   ;;  %v569_v35 = vld [vmem:[%s764_s5 + $0x38] sm:$0xff]  }
  0x1b   :  { %v435_v36 = vld [vmem:[%s763_s4] ss:$0 sm:$0xff] }
  0x1c   :  { %v444_v48 = vld [vmem:[%s765_s6] ss:$0 sm:$0xff] }
  0x1d   :  { %485 = vmatpush3.bf16.msra.mxu0 %v547_v3  ;;  %505 = vmatpush3.bf16.msra.mxu1 %v556_v8 }
  0x1e   :  { %486 = vmatprep.subr.bf16.mxu0 %v605_v0  ;;  %506 = vmatprep.subr.bf16.mxu1 %v605_v0 }
  0x21   :  { %487 = vmatpush3.bf16.msra.mxu0 %v548_v5  ;;  %507 = vmatpush3.bf16.msra.mxu1 %v557_v10 }
  0x22   :  { %488 = vmatprep.subr.bf16.mxu0 %v605_v0  ;;  %508 = vmatprep.subr.bf16.mxu1 %v605_v0 }
  0x25   :  { %489 = vmatpush3.bf16.msra.mxu0 %v549_v7  ;;  %509 = vmatpush3.bf16.msra.mxu1 %v558_v12 }
  0x26   :  { %490 = vmatprep.subr.bf16.mxu0 %v605_v0  ;;  %510 = vmatprep.subr.bf16.mxu1 %v605_v0 }
  0x29   :  { %491 = vmatpush3.bf16.msra.mxu0 %v550_v9  ;;  %511 = vmatpush3.bf16.msra.mxu1 %v559_v14 }
  0x2a   :  { %492 = vmatprep.subr.bf16.mxu0 %v605_v0  ;;  %512 = vmatprep.subr.bf16.mxu1 %v605_v0 }
  0x2d   :  { %493 = vmatpush3.bf16.msra.mxu0 %v551_v11  ;;  %513 = vmatpush3.bf16.msra.mxu1 %v560_v16 }
  0x2e   :  { %494 = vmatprep.subr.bf16.mxu0 %v605_v0  ;;  %514 = vmatprep.subr.bf16.mxu1 %v605_v0 }
  0x31   :  { %495 = vmatpush3.bf16.msra.mxu0 %v552_v13  ;;  %515 = vmatpush3.bf16.msra.mxu1 %v561_v17 }
  0x32   :  { %520 = vmatprep.subr.bf16.mxu0 %v605_v0 }
  0x34   :  { %497 = vmatmul.mubr.bf16.vlgmr.msra.gmra.mrb[0].mxu0 %v553_v15 }
  0x35   :  { %536 = vmatprep.mubr.msk.bf16.mxu0 %vm606_vm0, %v605_v0  ;;  %521 = vmatpush3.bf16.msra.mxu0 %v562_v18 }
  0x36   :  { %522 = vmatprep.subr.bf16.mxu0 %v605_v0 }
  0x39   :  { %523 = vmatpush3.bf16.msra.mxu0 %v563_v19 }
  0x3a   :  { %524 = vmatprep.subr.bf16.mxu0 %v605_v0 }
  0x3d   :  { %525 = vmatpush3.bf16.msra.mxu0 %v564_v20 }
  0x3e   :  { %526 = vmatprep.subr.bf16.mxu0 %v605_v0 }
  0x41   :  { %527 = vmatpush3.bf16.msra.mxu0 %v565_v21 }
  0x42   :  { %528 = vmatprep.subr.bf16.mxu0 %v605_v0 }
  0x45   :  { %529 = vmatpush3.bf16.msra.mxu0 %v566_v22 }
  0x46   :  { %530 = vmatprep.subr.bf16.mxu0 %v605_v0 }
  0x49   :  { %531 = vmatpush3.bf16.msra.mxu0 %v567_v23 }
  0x4a   :  { %532 = vmatprep.subr.bf16.mxu0 %v605_v0 }
  0x4d   :  { %533 = vmatpush3.bf16.msra.mxu0 %v568_v34 }
  0x4e   :  { %534 = vmatprep.subr.bf16.mxu0 %v605_v0 }
  0x51   :  { %535 = vmatpush3.bf16.msra.mxu0 %v569_v35 }
 0x107   :  { %v154_v25 = vpop.f32.mrb[0].mxu0 }
 0x108   :  { %v155_v26 = vadd.f32 %v425_v24, %v154_v25  ;;  %v498_v27 = vpop.f32.mrb[1].mxu0 }
 0x109   :  { %v157_v28 = vpop.f32.mrb[2].mxu0 }
 0x10a   :  { %v158_v29 = vadd.f32 %v425_v24, %v157_v28  ;;  %v499_v30 = vpop.f32.mrb[3].mxu0  ;;  %v161_v31 = vmax.f32 %v155_v26, 0.0 }
 0x10c   :  { %v162_v32 = vmax.f32 %v158_v29, 0.0 }
 0x10e   :  { %v163_v33 = vpack.c.bf16 %v162_v32, %v161_v31 }
 0x110   :  { %517 = vmatmul.mubr.bf16.vlgmr.msra.gmra.mrb[0].mxu1 %v163_v33 }
 0x1e3   :  { %v269_v37 = vpop.f32.mrb[0].mxu1 }
 0x1e4   :  { %v270_v38 = vadd.f32 %v435_v36, %v269_v37  ;;  %v518_v39 = vpop.f32.mrb[1].mxu1 }
 0x1e5   :  { %v272_v40 = vpop.f32.mrb[2].mxu1 }
 0x1e6   :  { %v273_v41 = vadd.f32 %v435_v36, %v272_v40  ;;  %v519_v42 = vpop.f32.mrb[3].mxu1  ;;  %v276_v43 = vmax.f32 %v270_v38, 0.0 }
 0x1e8   :  { %v277_v44 = vmax.f32 %v273_v41, 0.0 }
 0x1ea   :  { %v278_v45 = vpack.c.bf16 %v277_v44, %v276_v43 }
 0x1ec   :  { %537 = vmatmul.mubr.bf16.vlgmr.msra.gmra.mrb[4].mxu0 %v278_v45 }
 0x2bf   :  { %v384_v49 = vpop.f32.mrb[4].mxu0 }
 0x2c0   :  { %v385_v50 = vadd.f32 %v444_v48, %v384_v49  ;;  %v538_v51 = vpop.f32.mrb[5].mxu0 }
 0x2c1   :  { %v387_v52 = vpop.f32.mrb[6].mxu0 }
 0x2c2   :  { %v388_v53 = vadd.f32 %v444_v48, %v387_v52  ;;  %v539_v54 = vpop.f32.mrb[7].mxu0  ;;  %v394_v55 = vsel %vm393_vm1, %v385_v50, -1e+30 }
 0x2c3   :  { %396 = vmax.xlane.f32.xlu0 %v394_v55 }
 0x2c4   :  { %v395_v56 = vsel %vm393_vm1, %v388_v53, -1e+30 }
 0x2c7   :  { %398 = vmax.xlane.f32.xlu0 %v395_v56 }
 0x350   :  { %v397_v57 = vpop.xlane.xlu0 %396 }
 0x351   :  { %v400_v58 = vsub.f32 %v394_v55, %v397_v57 }
 0x353   :  { %v402_v59 = vmul.f32 1.442695, %v400_v58 }
 0x354   :  { %v399_v60 = vpop.xlane.xlu0 %398 }
 0x355   :  { %v401_v61 = vsub.f32 %v395_v56, %v399_v60  ;;  %570 = vpow2.f32 %v402_v59 }
 0x357   :  { %v404_v62 = vmul.f32 1.442695, %v401_v61 }
 0x359   :  { %572 = vpow2.f32 %v404_v62 }
 0x35f   :  { %v571_v63 = vpop.eup %570 }
 0x360   :  { %406 = vadd.xlane.f32.xlu1 %v571_v63 }
 0x363   :  { %v573_v0 = vpop.eup %572 }
 0x364   :  { %408 = vadd.xlane.f32.xlu1 %v573_v0 }
 0x3ed   :  { %v407_v1 = vpop.xlane.xlu1 %406 }
 0x3ee   :  { %574 = vlog2.f32 %v407_v1 }
 0x3f1   :  { %v409_v2 = vpop.xlane.xlu1 %408 }
 0x3f2   :  { %576 = vlog2.f32 %v409_v2 }
 0x3f8   :  { %v575_v3 = vpop.eup %574 }
 0x3f9   :  { %v411_v4 = vmul.f32 0.6931472, %v575_v3 }
 0x3fb   :  { %v414_v5 = vsub.f32 %v400_v58, %v411_v4 }
 0x3fc   :  { %v577_v6 = vpop.eup %576 }
 0x3fd   :  { %v416_v7 = vsel %vm393_vm1, %v414_v5, 0.0  ;;  %v413_v8 = vmul.f32 0.6931472, %v577_v6 }
 0x3fe   :  { %418 = vst [vmem:[%s766_s7] sm:$0xff] %v416_v7 }
 0x3ff   :  { %v415_v9 = vsub.f32 %v401_v61, %v413_v8 }
 0x401   :  { %v417_v10 = vsel %vm393_vm1, %v415_v9, 0.0 }
 0x402   :  { %419 = vst [vmem:[%s766_s7 + $0x8] sm:$0xff] %v417_v10 }
 0x403   :  { %424 = vsyncpa [#allocation3], 1 }

</bundles_post_ra>
